<compile_context>
chip_gen: v7x
topology: tpu7x:2x2x1
jax: 0.10.0
libtpu: 0.0.40
codegen_flags: <defaults>
</compile_context>

<pallas_src>
import functools

import jax
import jax.numpy as jnp
from jax.experimental import pallas as pl
from jax.experimental.pallas import tpu as pltpu


def _spiking_mlp_kernel(x_ref, w1_ref, b1_ref, w2_ref, b2_ref, o_ref, *,
                        T, inv_tau, v_th):
    # x tile: (tm, Cp) bf16; w1: (Cp, Hp) bf16; w2: (Hp, Op) bf16;
    # biases: (1, Hp)/(1, Op) f32.
    x = x_ref[...]
    w1 = w1_ref[...]
    b1 = b1_ref[...]
    w2 = w2_ref[...]
    b2 = b2_ref[...]

    tm = x.shape[0]
    out_dim = w2.shape[1]

    # fc1 — input is identical across timesteps, compute once (bf16 MXU, f32 acc).
    y1 = jnp.dot(x, w1, preferred_element_type=jnp.float32) + b1

    # LIF (spikingjelly LIFNode, decay_input=True, v_reset=0, v_th=1):
    #   v <- v*(1-1/tau) + y*(1/tau); spike = (v >= v_th); v <- where(spike, 0, v)
    # Loop-invariant charge term hoisted out of the unrolled T loop.
    alpha = jnp.float32(1.0 - inv_tau)
    y1_scaled = y1 * jnp.float32(inv_tau)

    v1 = jnp.zeros_like(y1)
    v2 = jnp.zeros((tm, out_dim), jnp.float32)
    acc = jnp.zeros((tm, out_dim), jnp.float32)

    for _ in range(T):  # T is a small static constant -> fully unrolled
        # lif1
        v1 = v1 * alpha + y1_scaled
        fired1 = v1 >= v_th
        s1 = jnp.where(fired1, 1.0, 0.0).astype(jnp.bfloat16)  # spikes exact in bf16
        v1 = jnp.where(fired1, 0.0, v1)

        # fc2 fused per timestep (bf16 MXU, f32 acc) — no (T*tm, Hp) slab.
        y2 = jnp.dot(s1, w2, preferred_element_type=jnp.float32) + b2

        # lif2 + running sum over T
        v2 = v2 * alpha + y2 * jnp.float32(inv_tau)
        fired2 = v2 >= v_th
        acc = acc + jnp.where(fired2, 1.0, 0.0)
        v2 = jnp.where(fired2, 0.0, v2)

    o_ref[...] = (acc * (1.0 / T)).astype(o_ref.dtype)


def _round_up(x, m):
    return ((x + m - 1) // m) * m


def _cdiv(a, b):
    return -(-a // b)


def _pick_tm(N, tm_max):
    """Pick the token tile: minimize pad rows, keep >=2 grid steps when N allows
    (v7x has 2 TensorCores; a 1-step grid runs on one of them)."""
    steps = max(1, _cdiv(N, tm_max))
    if steps < 2 and N > 8:
        steps = 2
    return max(8, _round_up(_cdiv(N, steps), 8))


def _pad_to(a, shape):
    if a.shape != shape:
        a = jnp.pad(a, [(0, s - d) for d, s in zip(a.shape, shape)])
    return a


def spiking_mlp(x, w1, b1, w2, b2, *, T=4, tau=2.0, v_th=1.0, tm_max=256):
    """x: (B, S, C) float32. w1: (C, H), b1: (H,), w2: (H, O), b2: (O,).

    On v6e (128 MiB VMEM) tm_max=512 is a reasonable bump for large N; keep 256
    (or re-check the budget) on v7x (64 MiB VMEM).
    """
    B, S, C = x.shape
    H = w1.shape[1]
    O = w2.shape[1]
    N = B * S

    # Lane-pad feature dims to multiples of 128 (dense vregs, unmasked stores).
    Cp = _round_up(C, 128)
    Hp = _round_up(H, 128)
    Op = _round_up(O, 128)

    tm = _pick_tm(N, tm_max)
    Np = _round_up(N, tm)

    # Only copy/pad when actually misaligned; bf16 cast for MXU-native matmuls.
    x2d = _pad_to(x.reshape(N, C).astype(jnp.bfloat16), (Np, Cp))
    w1_p = _pad_to(w1.astype(jnp.bfloat16), (Cp, Hp))
    w2_p = _pad_to(w2.astype(jnp.bfloat16), (Hp, Op))
    b1_p = _pad_to(b1.astype(jnp.float32).reshape(1, H), (1, Hp))
    b2_p = _pad_to(b2.astype(jnp.float32).reshape(1, O), (1, Op))

    kernel = functools.partial(
        _spiking_mlp_kernel, T=T, inv_tau=1.0 / float(tau), v_th=float(v_th)
    )

    # VMEM budget: single-buffered bf16 weights, double-buffered x/out tiles,
    # headroom for the f32 LIF intermediates / spills.
    bf16, f32 = 2, 4
    need = (
        Cp * Hp * bf16 + Hp * Op * bf16          # w1, w2 (single-buffered)
        + 8 * (Hp + Op) * f32                    # biases (sublane-padded)
        + 2 * tm * Cp * bf16 + 2 * tm * Op * f32  # x / out tiles (double-buffered)
        + (3 * tm * Hp + 4 * tm * Op) * f32      # y1/v1/v2/acc/y2 live values
    )
    vmem_limit = min(max(32 << 20, int(1.5 * need) + (2 << 20)), 128 << 20)

    out2d = pl.pallas_call(
        kernel,
        out_shape=jax.ShapeDtypeStruct((Np, Op), jnp.float32),
        grid_spec=pltpu.PrefetchScalarGridSpec(
            num_scalar_prefetch=0,
            grid=(Np // tm,),
            in_specs=[
                pl.BlockSpec((tm, Cp), lambda i: (i, 0)),   # x tokens tile
                pl.BlockSpec((Cp, Hp), lambda i: (0, 0),    # fc1 weight (resident)
                             pipeline_mode=pl.Buffered(buffer_count=1)),
                pl.BlockSpec((1, Hp), lambda i: (0, 0),     # fc1 bias
                             pipeline_mode=pl.Buffered(buffer_count=1)),
                pl.BlockSpec((Hp, Op), lambda i: (0, 0),    # fc2 weight (resident)
                             pipeline_mode=pl.Buffered(buffer_count=1)),
                pl.BlockSpec((1, Op), lambda i: (0, 0),     # fc2 bias
                             pipeline_mode=pl.Buffered(buffer_count=1)),
            ],
            out_specs=pl.BlockSpec((tm, Op), lambda i: (i, 0)),
        ),
        compiler_params=pltpu.CompilerParams(
            dimension_semantics=("parallel",),
            vmem_limit_bytes=vmem_limit,
        ),
    )(x2d, w1_p, b1_p, w2_p, b2_p)

    return out2d[:N, :O].reshape(B, S, O)


def spiking_mlp_ref(x, w1, b1, w2, b2, *, T=4, tau=2.0, v_th=1.0,
                    matmul_dtype=jnp.bfloat16):
    """Pure-JAX reference with the module's forward semantics.

    matmul_dtype=jnp.bfloat16 mirrors the kernel's MXU operand dtype (spikes are
    exact in bf16; only weight/activation rounding differs from the f32 PyTorch
    path).  Pass jnp.float32 for the exact-f32 reference.  The LIF recurrence
    v*(1-1/tau) + y/tau is algebraically identical to spikingjelly's
    v + (y - v)/tau with v_reset=0, decay_input=True.
    """
    inv_tau = 1.0 / tau
    alpha = 1.0 - inv_tau
    y1 = jnp.dot(x.astype(matmul_dtype), w1.astype(matmul_dtype),
                 preferred_element_type=jnp.float32) + b1
    v1 = jnp.zeros_like(y1)
    v2 = jnp.zeros(y1.shape[:-1] + (w2.shape[1],), jnp.float32)
    acc = jnp.zeros_like(v2)
    for _ in range(T):
        v1 = v1 * alpha + y1 * inv_tau
        s1 = (v1 >= v_th).astype(jnp.float32)
        v1 = v1 * (1.0 - s1)
        y2 = jnp.dot(s1.astype(matmul_dtype), w2.astype(matmul_dtype),
                     preferred_element_type=jnp.float32) + b2
        v2 = v2 * alpha + y2 * inv_tau
        s2 = (v2 >= v_th).astype(jnp.float32)
        v2 = v2 * (1.0 - s2)
        acc = acc + s2
    return acc / T


if __name__ == "__main__":
    # Small shapes consistent with the module's forward: x is (B, S, C).
    B, S = 2, 16
    in_features, hidden_features, out_features, T = 32, 64, 32, 4

    key = jax.random.PRNGKey(0)
    kx, kw1, kb1, kw2, kb2 = jax.random.split(key, 5)

    x = jax.random.normal(kx, (B, S, in_features), jnp.float32)

    # Deterministic synthetic parameters (scaled so some spikes actually fire).
    w1 = jax.random.normal(kw1, (in_features, hidden_features), jnp.float32) / jnp.sqrt(
        in_features
    )
    b1 = 0.1 * jax.random.normal(kb1, (hidden_features,), jnp.float32)
    w2 = jax.random.normal(kw2, (hidden_features, out_features), jnp.float32) / jnp.sqrt(
        hidden_features
    )
    b2 = 0.1 * jax.random.normal(kb2, (out_features,), jnp.float32)

    out = spiking_mlp(x, w1, b1, w2, b2, T=T)
    out = jax.block_until_ready(out)

    # Reference uses the same bf16 matmul-operand quantization as the kernel, so
    # the hard spike thresholds see identical pre-activations (LIF math is f32 in
    # both).  Tolerance covers accumulation-order ULPs only.
    ref = spiking_mlp_ref(x, w1, b1, w2, b2, T=T)
    assert out.shape == (B, S, out_features)
    assert jnp.allclose(out, ref, atol=1e-4), "mismatch vs pure-JAX reference"

    print("KERNEL_OK")
</pallas_src>

<mosaic_0001>
module attributes {stable_mosaic.version = 11 : i64} {
  func.func @_spiking_mlp_kernel(%arg0: i32, %arg1: memref<16x128xbf16, #tpu.memory_space<vmem>>, %arg2: memref<128x128xbf16, #tpu.memory_space<vmem>>, %arg3: memref<1x128xf32, #tpu.memory_space<vmem>>, %arg4: memref<128x128xbf16, #tpu.memory_space<vmem>>, %arg5: memref<1x128xf32, #tpu.memory_space<vmem>>, %arg6: memref<16x128xf32, #tpu.memory_space<vmem>>) attributes {dimension_semantics = [#tpu.dimension_semantics<parallel>], iteration_bounds = array<i64: 2>, scalar_prefetch = 0 : i64, scratch_operands = 0 : i64, tpu.core_type = #tpu.core_type<tc>, window_params = [{transform_indices = @transform_0, window_bounds = array<i64: 16, 128>}, {pipeline_mode = #tpu.pipeline_mode<synchronous>, transform_indices = @transform_1, window_bounds = array<i64: 128, 128>}, {pipeline_mode = #tpu.pipeline_mode<synchronous>, transform_indices = @transform_2, window_bounds = array<i64: 1, 128>}, {pipeline_mode = #tpu.pipeline_mode<synchronous>, transform_indices = @transform_3, window_bounds = array<i64: 128, 128>}, {pipeline_mode = #tpu.pipeline_mode<synchronous>, transform_indices = @transform_4, window_bounds = array<i64: 1, 128>}, {transform_indices = @transform_5, window_bounds = array<i64: 16, 128>}]} {
    %c0 = arith.constant 0 : index
    %c0_0 = arith.constant 0 : index
    %0 = vector.load %arg1[%c0, %c0_0] : memref<16x128xbf16, #tpu.memory_space<vmem>>, vector<16x128xbf16>
    %c0_1 = arith.constant 0 : index
    %c0_2 = arith.constant 0 : index
    %1 = vector.load %arg2[%c0_1, %c0_2] : memref<128x128xbf16, #tpu.memory_space<vmem>>, vector<128x128xbf16>
    %c0_3 = arith.constant 0 : index
    %c0_4 = arith.constant 0 : index
    %2 = vector.load %arg3[%c0_3, %c0_4] : memref<1x128xf32, #tpu.memory_space<vmem>>, vector<1x128xf32>
    %c0_5 = arith.constant 0 : index
    %c0_6 = arith.constant 0 : index
    %3 = vector.load %arg4[%c0_5, %c0_6] : memref<128x128xbf16, #tpu.memory_space<vmem>>, vector<128x128xbf16>
    %c0_7 = arith.constant 0 : index
    %c0_8 = arith.constant 0 : index
    %4 = vector.load %arg5[%c0_7, %c0_8] : memref<1x128xf32, #tpu.memory_space<vmem>>, vector<1x128xf32>
    %cst = arith.constant dense<0.000000e+00> : vector<16x128xf32>
    %5 = tpu.matmul %0, %1, %cst {dimension_numbers = #tpu.dot_dimension_numbers<[1], [0], [0], [1], [0, 0, 1, 1], [], []>} : vector<16x128xbf16>, vector<128x128xbf16>, vector<16x128xf32> -> vector<16x128xf32>
    %6 = vector.broadcast %2 : vector<1x128xf32> to vector<16x128xf32>
    %7 = arith.addf %5, %6 : vector<16x128xf32>
    %cst_9 = arith.constant 5.000000e-01 : f32
    %8 = vector.broadcast %cst_9 : f32 to vector<16x128xf32>
    %9 = arith.mulf %7, %8 : vector<16x128xf32>
    %cst_10 = arith.constant 0.000000e+00 : f32
    %10 = vector.broadcast %cst_10 : f32 to vector<16x128xf32>
    %cst_11 = arith.constant 0.000000e+00 : f32
    %11 = vector.broadcast %cst_11 : f32 to vector<16x128xf32>
    %cst_12 = arith.constant 0.000000e+00 : f32
    %12 = vector.broadcast %cst_12 : f32 to vector<16x128xf32>
    %cst_13 = arith.constant 5.000000e-01 : f32
    %13 = vector.broadcast %cst_13 : f32 to vector<16x128xf32>
    %14 = arith.mulf %10, %13 : vector<16x128xf32>
    %15 = arith.addf %14, %9 : vector<16x128xf32>
    %cst_14 = arith.constant 1.000000e+00 : f32
    %16 = vector.broadcast %cst_14 : f32 to vector<16x128xf32>
    %17 = arith.cmpf oge, %15, %16 : vector<16x128xf32>
    %cst_15 = arith.constant 1.000000e+00 : f32
    %cst_16 = arith.constant 0.000000e+00 : f32
    %18 = vector.broadcast %cst_15 : f32 to vector<16x128xf32>
    %19 = vector.broadcast %cst_16 : f32 to vector<16x128xf32>
    %20 = arith.select %17, %18, %19 : vector<16x128xi1>, vector<16x128xf32>
    %21 = arith.truncf %20 : vector<16x128xf32> to vector<16x128xbf16>
    %cst_17 = arith.constant 0.000000e+00 : f32
    %22 = vector.broadcast %cst_17 : f32 to vector<16x128xf32>
    %23 = arith.select %17, %22, %15 : vector<16x128xi1>, vector<16x128xf32>
    %cst_18 = arith.constant dense<0.000000e+00> : vector<16x128xf32>
    %24 = tpu.matmul %21, %3, %cst_18 {dimension_numbers = #tpu.dot_dimension_numbers<[1], [0], [0], [1], [0, 0, 1, 1], [], []>} : vector<16x128xbf16>, vector<128x128xbf16>, vector<16x128xf32> -> vector<16x128xf32>
    %25 = vector.broadcast %4 : vector<1x128xf32> to vector<16x128xf32>
    %26 = arith.addf %24, %25 : vector<16x128xf32>
    %cst_19 = arith.constant 5.000000e-01 : f32
    %27 = vector.broadcast %cst_19 : f32 to vector<16x128xf32>
    %28 = arith.mulf %11, %27 : vector<16x128xf32>
    %cst_20 = arith.constant 5.000000e-01 : f32
    %29 = vector.broadcast %cst_20 : f32 to vector<16x128xf32>
    %30 = arith.mulf %26, %29 : vector<16x128xf32>
    %31 = arith.addf %28, %30 : vector<16x128xf32>
    %cst_21 = arith.constant 1.000000e+00 : f32
    %32 = vector.broadcast %cst_21 : f32 to vector<16x128xf32>
    %33 = arith.cmpf oge, %31, %32 : vector<16x128xf32>
    %cst_22 = arith.constant 1.000000e+00 : f32
    %cst_23 = arith.constant 0.000000e+00 : f32
    %34 = vector.broadcast %cst_22 : f32 to vector<16x128xf32>
    %35 = vector.broadcast %cst_23 : f32 to vector<16x128xf32>
    %36 = arith.select %33, %34, %35 : vector<16x128xi1>, vector<16x128xf32>
    %37 = arith.addf %12, %36 : vector<16x128xf32>
    %cst_24 = arith.constant 0.000000e+00 : f32
    %38 = vector.broadcast %cst_24 : f32 to vector<16x128xf32>
    %39 = arith.select %33, %38, %31 : vector<16x128xi1>, vector<16x128xf32>
    %cst_25 = arith.constant 5.000000e-01 : f32
    %40 = vector.broadcast %cst_25 : f32 to vector<16x128xf32>
    %41 = arith.mulf %23, %40 : vector<16x128xf32>
    %42 = arith.addf %41, %9 : vector<16x128xf32>
    %cst_26 = arith.constant 1.000000e+00 : f32
    %43 = vector.broadcast %cst_26 : f32 to vector<16x128xf32>
    %44 = arith.cmpf oge, %42, %43 : vector<16x128xf32>
    %cst_27 = arith.constant 1.000000e+00 : f32
    %cst_28 = arith.constant 0.000000e+00 : f32
    %45 = vector.broadcast %cst_27 : f32 to vector<16x128xf32>
    %46 = vector.broadcast %cst_28 : f32 to vector<16x128xf32>
    %47 = arith.select %44, %45, %46 : vector<16x128xi1>, vector<16x128xf32>
    %48 = arith.truncf %47 : vector<16x128xf32> to vector<16x128xbf16>
    %cst_29 = arith.constant 0.000000e+00 : f32
    %49 = vector.broadcast %cst_29 : f32 to vector<16x128xf32>
    %50 = arith.select %44, %49, %42 : vector<16x128xi1>, vector<16x128xf32>
    %cst_30 = arith.constant dense<0.000000e+00> : vector<16x128xf32>
    %51 = tpu.matmul %48, %3, %cst_30 {dimension_numbers = #tpu.dot_dimension_numbers<[1], [0], [0], [1], [0, 0, 1, 1], [], []>} : vector<16x128xbf16>, vector<128x128xbf16>, vector<16x128xf32> -> vector<16x128xf32>
    %52 = vector.broadcast %4 : vector<1x128xf32> to vector<16x128xf32>
    %53 = arith.addf %51, %52 : vector<16x128xf32>
    %cst_31 = arith.constant 5.000000e-01 : f32
    %54 = vector.broadcast %cst_31 : f32 to vector<16x128xf32>
    %55 = arith.mulf %39, %54 : vector<16x128xf32>
    %cst_32 = arith.constant 5.000000e-01 : f32
    %56 = vector.broadcast %cst_32 : f32 to vector<16x128xf32>
    %57 = arith.mulf %53, %56 : vector<16x128xf32>
    %58 = arith.addf %55, %57 : vector<16x128xf32>
    %cst_33 = arith.constant 1.000000e+00 : f32
    %59 = vector.broadcast %cst_33 : f32 to vector<16x128xf32>
    %60 = arith.cmpf oge, %58, %59 : vector<16x128xf32>
    %cst_34 = arith.constant 1.000000e+00 : f32
    %cst_35 = arith.constant 0.000000e+00 : f32
    %61 = vector.broadcast %cst_34 : f32 to vector<16x128xf32>
    %62 = vector.broadcast %cst_35 : f32 to vector<16x128xf32>
    %63 = arith.select %60, %61, %62 : vector<16x128xi1>, vector<16x128xf32>
    %64 = arith.addf %37, %63 : vector<16x128xf32>
    %cst_36 = arith.constant 0.000000e+00 : f32
    %65 = vector.broadcast %cst_36 : f32 to vector<16x128xf32>
    %66 = arith.select %60, %65, %58 : vector<16x128xi1>, vector<16x128xf32>
    %cst_37 = arith.constant 5.000000e-01 : f32
    %67 = vector.broadcast %cst_37 : f32 to vector<16x128xf32>
    %68 = arith.mulf %50, %67 : vector<16x128xf32>
    %69 = arith.addf %68, %9 : vector<16x128xf32>
    %cst_38 = arith.constant 1.000000e+00 : f32
    %70 = vector.broadcast %cst_38 : f32 to vector<16x128xf32>
    %71 = arith.cmpf oge, %69, %70 : vector<16x128xf32>
    %cst_39 = arith.constant 1.000000e+00 : f32
    %cst_40 = arith.constant 0.000000e+00 : f32
    %72 = vector.broadcast %cst_39 : f32 to vector<16x128xf32>
    %73 = vector.broadcast %cst_40 : f32 to vector<16x128xf32>
    %74 = arith.select %71, %72, %73 : vector<16x128xi1>, vector<16x128xf32>
    %75 = arith.truncf %74 : vector<16x128xf32> to vector<16x128xbf16>
    %cst_41 = arith.constant 0.000000e+00 : f32
    %76 = vector.broadcast %cst_41 : f32 to vector<16x128xf32>
    %77 = arith.select %71, %76, %69 : vector<16x128xi1>, vector<16x128xf32>
    %cst_42 = arith.constant dense<0.000000e+00> : vector<16x128xf32>
    %78 = tpu.matmul %75, %3, %cst_42 {dimension_numbers = #tpu.dot_dimension_numbers<[1], [0], [0], [1], [0, 0, 1, 1], [], []>} : vector<16x128xbf16>, vector<128x128xbf16>, vector<16x128xf32> -> vector<16x128xf32>
    %79 = vector.broadcast %4 : vector<1x128xf32> to vector<16x128xf32>
    %80 = arith.addf %78, %79 : vector<16x128xf32>
    %cst_43 = arith.constant 5.000000e-01 : f32
    %81 = vector.broadcast %cst_43 : f32 to vector<16x128xf32>
    %82 = arith.mulf %66, %81 : vector<16x128xf32>
    %cst_44 = arith.constant 5.000000e-01 : f32
    %83 = vector.broadcast %cst_44 : f32 to vector<16x128xf32>
    %84 = arith.mulf %80, %83 : vector<16x128xf32>
    %85 = arith.addf %82, %84 : vector<16x128xf32>
    %cst_45 = arith.constant 1.000000e+00 : f32
    %86 = vector.broadcast %cst_45 : f32 to vector<16x128xf32>
    %87 = arith.cmpf oge, %85, %86 : vector<16x128xf32>
    %cst_46 = arith.constant 1.000000e+00 : f32
    %cst_47 = arith.constant 0.000000e+00 : f32
    %88 = vector.broadcast %cst_46 : f32 to vector<16x128xf32>
    %89 = vector.broadcast %cst_47 : f32 to vector<16x128xf32>
    %90 = arith.select %87, %88, %89 : vector<16x128xi1>, vector<16x128xf32>
    %91 = arith.addf %64, %90 : vector<16x128xf32>
    %cst_48 = arith.constant 0.000000e+00 : f32
    %92 = vector.broadcast %cst_48 : f32 to vector<16x128xf32>
    %93 = arith.select %87, %92, %85 : vector<16x128xi1>, vector<16x128xf32>
    %cst_49 = arith.constant 5.000000e-01 : f32
    %94 = vector.broadcast %cst_49 : f32 to vector<16x128xf32>
    %95 = arith.mulf %77, %94 : vector<16x128xf32>
    %96 = arith.addf %95, %9 : vector<16x128xf32>
    %cst_50 = arith.constant 1.000000e+00 : f32
    %97 = vector.broadcast %cst_50 : f32 to vector<16x128xf32>
    %98 = arith.cmpf oge, %96, %97 : vector<16x128xf32>
    %cst_51 = arith.constant 1.000000e+00 : f32
    %cst_52 = arith.constant 0.000000e+00 : f32
    %99 = vector.broadcast %cst_51 : f32 to vector<16x128xf32>
    %100 = vector.broadcast %cst_52 : f32 to vector<16x128xf32>
    %101 = arith.select %98, %99, %100 : vector<16x128xi1>, vector<16x128xf32>
    %102 = arith.truncf %101 : vector<16x128xf32> to vector<16x128xbf16>
    %cst_53 = arith.constant dense<0.000000e+00> : vector<16x128xf32>
    %103 = tpu.matmul %102, %3, %cst_53 {dimension_numbers = #tpu.dot_dimension_numbers<[1], [0], [0], [1], [0, 0, 1, 1], [], []>} : vector<16x128xbf16>, vector<128x128xbf16>, vector<16x128xf32> -> vector<16x128xf32>
    %104 = vector.broadcast %4 : vector<1x128xf32> to vector<16x128xf32>
    %105 = arith.addf %103, %104 : vector<16x128xf32>
    %cst_54 = arith.constant 5.000000e-01 : f32
    %106 = vector.broadcast %cst_54 : f32 to vector<16x128xf32>
    %107 = arith.mulf %93, %106 : vector<16x128xf32>
    %cst_55 = arith.constant 5.000000e-01 : f32
    %108 = vector.broadcast %cst_55 : f32 to vector<16x128xf32>
    %109 = arith.mulf %105, %108 : vector<16x128xf32>
    %110 = arith.addf %107, %109 : vector<16x128xf32>
    %cst_56 = arith.constant 1.000000e+00 : f32
    %111 = vector.broadcast %cst_56 : f32 to vector<16x128xf32>
    %112 = arith.cmpf oge, %110, %111 : vector<16x128xf32>
    %cst_57 = arith.constant 1.000000e+00 : f32
    %cst_58 = arith.constant 0.000000e+00 : f32
    %113 = vector.broadcast %cst_57 : f32 to vector<16x128xf32>
    %114 = vector.broadcast %cst_58 : f32 to vector<16x128xf32>
    %115 = arith.select %112, %113, %114 : vector<16x128xi1>, vector<16x128xf32>
    %116 = arith.addf %91, %115 : vector<16x128xf32>
    %cst_59 = arith.constant 2.500000e-01 : f32
    %117 = vector.broadcast %cst_59 : f32 to vector<16x128xf32>
    %118 = arith.mulf %116, %117 : vector<16x128xf32>
    %c0_60 = arith.constant 0 : index
    %c0_61 = arith.constant 0 : index
    %119 = vector.load %arg6[%c0_60, %c0_61] : memref<16x128xf32, #tpu.memory_space<vmem>>, vector<16x128xf32>
    tpu.vector_store %arg6[%c0_60, %c0_61], %118 {strides = array<i32>} : memref<16x128xf32, #tpu.memory_space<vmem>>, vector<16x128xf32>,
    return
  }
  func.func @transform_0(%arg0: i32) -> (i32, i32) {
    %c0_i32 = arith.constant 0 : i32
    %c0_i32_0 = arith.constant 0 : i32
    return %arg0, %c0_i32 : i32, i32
  }
  func.func @transform_1(%arg0: i32) -> (i32, i32) {
    %c0_i32 = arith.constant 0 : i32
    %c0_i32_0 = arith.constant 0 : i32
    %c0_i32_1 = arith.constant 0 : i32
    return %c0_i32, %c0_i32_0 : i32, i32
  }
  func.func @transform_2(%arg0: i32) -> (i32, i32) {
    %c0_i32 = arith.constant 0 : i32
    %c0_i32_0 = arith.constant 0 : i32
    %c0_i32_1 = arith.constant 0 : i32
    return %c0_i32, %c0_i32_0 : i32, i32
  }
  func.func @transform_3(%arg0: i32) -> (i32, i32) {
    %c0_i32 = arith.constant 0 : i32
    %c0_i32_0 = arith.constant 0 : i32
    %c0_i32_1 = arith.constant 0 : i32
    return %c0_i32, %c0_i32_0 : i32, i32
  }
  func.func @transform_4(%arg0: i32) -> (i32, i32) {
    %c0_i32 = arith.constant 0 : i32
    %c0_i32_0 = arith.constant 0 : i32
    %c0_i32_1 = arith.constant 0 : i32
    return %c0_i32, %c0_i32_0 : i32, i32
  }
  func.func @transform_5(%arg0: i32) -> (i32, i32) {
    %c0_i32 = arith.constant 0 : i32
    %c0_i32_0 = arith.constant 0 : i32
    return %arg0, %c0_i32 : i32, i32
  }
}

</mosaic_0001>

<bundles_post_ra>
// kernel: tpu_custom_call.1
= control target key start
LH: loop header
LB: loop body
LE: loop exit
PB: predicated region body
PF: predicated region fallthrough
CT: control target
= control target key end

     0   :  { %10 = vsyncpa [#allocation3], 0  ;;  %s1691_s0 = inlined_call_operand.hbm [shape: bf16[32,128], index: 0, kind: input, shape index: {}]   ;;  %s1692_s1 = inlined_call_operand.hbm [shape: bf16[128,128], index: 1, kind: input, shape index: {}]   ;;  %s1693_s2 = inlined_call_operand.vmem [shape: f32[1,128], index: 2, kind: input, shape index: {}]   ;;  %s1694_s3 = inlined_call_operand.hbm [shape: bf16[128,128], index: 3, kind: input, shape index: {}]   ;;  %s1695_s4 = inlined_call_operand.vmem [shape: f32[1,128], index: 4, kind: input, shape index: {}]   ;;  %s1696_s5 = inlined_call_operand.hbm [shape: f32[32,128], index: 5, kind: output, shape index: {}]  }
   0x1   :  { %12 = vsyncpa [#allocation3 + $0x1], 0 }
   0x2   :  { %13 = vsyncpa [#allocation6], 0 }
   0x3   :  { %14 = vsyncpa [#allocation4], 0 }
   0x4   :  { %16 = vsyncpa [#allocation4 + $0x1], 0  ;;  %s1316_s18 = smov 0   ;;  %s1318_s19 = smov 0  }
   0x5   :  { %s1320_s20 = smov 0   ;;  %s1322_s21 = smov 0  }
   0x6 LB: > { %s1337_s22 = sadd.s32 4294967295, %s1273_s21   ;;  %s834_s23 = sadd.s32 4294967294, %s1273_s21   ;;  %s1273_s21 = sphi %s1322_s21, %s1720_s21   ;;  %s1269_s20 = sphi %s1320_s20, %s1719_s20   ;;  %s1265_s19 = sphi %s1318_s19, %s1718_s19   ;;  %s1261_s18 = sphi %s1316_s18, %s1717_s18  }
   0x7   : > { %p42_p0 = scmp.ne.s32.totalorder %s1265_s19, %s1261_s18  ;;  %p1697_p1 = scmp.eq.s32.totalorder %s1337_s22, 0 }
   0x8   : > { %p156_p3 = scmp.eq.s32.totalorder %s834_s23, 1  ;;  %p835_p5 = scmp.ge.s32.totalorder %s1273_s21, 1 }
   0x9   : > { %p1346_p4 = por %p1697_p1, %p42_p0  ;;  %p163_p7 = scmp.lt.s32.totalorder %s1273_s21, 3 }
   0xa   : > { %p1351_p6 = por %p156_p3, %p42_p0  ;;  %s1275_s27 = smov [#allocation5]  }
   0xb   : > { %s1700_s24 = scalar_select %p1346_p4, 1, 0 }
   0xc   : > { %s1701_s25 = scalar_select %p1351_p6, 1, 0 }
   0xd   : > { %p1356_p8 = pnand %p835_p5, %p163_p7  ;;  %s175_s28 = sshll.u32 %s1275_s27, 4  ;;  %s1360_s28 = int_to_ptr.vmem [resolvable:$true] %s175_s28 }
   0xe   : > { %s1276_s30 = smov [#allocation7]   ;;  %s1117_s9 = scalar_lea.hbm %s1692_s1, 1024 }
   0xf   : > { %p1038_p9 = pneg %p1356_p8  ;;  %s191_s6 = sshll.u32 %s1276_s30, 4  ;;  %s1371_s6 = int_to_ptr.vmem [resolvable:$true] %s191_s6 }
  0x10   : > { %p1118_p12 = scmp.ne.s32.totalorder %s1692_s1, %s1117_s9  ;;  %p1124_p5 = scmp.lt.u32.totalorder %s1117_s9, %s1692_s1 }
  0x11   : > { %p1367_p11 = pnand %p1038_p9, %p1697_p1 }
  0x13   : > { %p1119_p13 = pneg %p1367_p11 }
  0x15   : > { %p1120_p0 = pnand %p1119_p13, %p1118_p12 }
  0x17   : > { %p1121_p3 = pneg %p1120_p0 }
  0x19   : > { %p1126_p7 = pnand %p1124_p5, %p1121_p3 }
  0x1b   : > { %1129 = shalt.err (!%p1126_p7)
}
  0x1c   : > { %s1130_s14 = scalar_lea.vmem %s1360_s28, 1024  ;;  %p1138_p2 = scmp.lt.s32.totalorder %s1360_s28, %s1360_s28 }
  0x1d   : > { %p1131_p9 = scmp.ne.s32.totalorder %s1360_s28, %s1130_s14  ;;  %p1139_p12 = scmp.lt.s32.totalorder %s1130_s14, %s1130_s14 }
  0x1f   : > { %p1133_p10 = pnand %p1131_p9, %p1119_p13  ;;  %p1140_p0 = por %p1139_p12, %p1138_p2 }
  0x21   : > { %p1134_p1 = pneg %p1133_p10 }
  0x23   : > { %p1141_p6 = pnand %p1140_p0, %p1134_p1 }
  0x25   : > { %1144 = shalt.err (!%p1141_p6)
}
  0x26   : > { %s1277_s15 = smov 64   ;;  %s1278_s16 = smov 4  }
  0x27   : > { %1041 = dma.hbm_to_vmem [thread:$0]  (!%p1367_p11), %s1692_s1, 1024, %s1360_s28, [#allocation6], %s1277_s15, %s1277_s15, %s1278_s16  }
  0x28   : > { %s1145_s7 = scalar_lea.hbm %s1694_s3, 1024 }
  0x29   : > { %p1146_p1 = scmp.ne.s32.totalorder %s1694_s3, %s1145_s7  ;;  %p1152_p10 = scmp.lt.u32.totalorder %s1145_s7, %s1694_s3 }
  0x2b   : > { %p1148_p2 = pnand %p1146_p1, %p1119_p13 }
  0x2d   : > { %p1149_p6 = pneg %p1148_p2 }
  0x2f   : > { %p1154_p3 = pnand %p1152_p10, %p1149_p6 }
  0x31   : > { %1157 = shalt.err (!%p1154_p3)
}
  0x32   : > { %s1158_s28 = scalar_lea.vmem %s1371_s6, 1024  ;;  %p1166_p12 = scmp.lt.s32.totalorder %s1371_s6, %s1371_s6 }
  0x33   : > { %p1159_p5 = scmp.ne.s32.totalorder %s1371_s6, %s1158_s28  ;;  %p1167_p0 = scmp.lt.s32.totalorder %s1158_s28, %s1158_s28 }
  0x35   : > { %p1161_p7 = pnand %p1159_p5, %p1119_p13  ;;  %p1168_p1 = por %p1167_p0, %p1166_p12 }
  0x37   : > { %p1162_p9 = pneg %p1161_p7 }
  0x39   : > { %p1169_p2 = pnand %p1168_p1, %p1162_p9 }
  0x3b   : > { %1172 = shalt.err (!%p1169_p2)
}
  0x3c   : > { %1044 = dma.hbm_to_vmem [thread:$0]  (!%p1367_p11), %s1694_s3, 1024, %s1371_s6, [#allocation6], %s1277_s15, %s1277_s15, %s1278_s16  }
  0x3d   : > { %s1432_s29 = sadd.s32 1, %s1273_s21   ;;  %s29_s14 = sadd.s32 1, %s1269_s20 }
  0x3e   : > { %s26_s17 = ssub.s32 %s1273_s21, %s1432_s29  ;;  %p36_p13 = scmp.ne.s32.totalorder %s1269_s20, %s1265_s19 }
  0x3f   : > { %p27_p6 = scmp.eq.s32.totalorder %s26_s17, 0  ;;  %p37_p10 = scmp.eq.s32.totalorder %s1273_s21, 0 }
  0x40   : > { %p1704_p3 = scmp.eq.s32.totalorder %s1337_s22, 1  ;;  %p1055_p7 = scmp.lt.s32.totalorder %s1273_s21, 2 }
  0x41   : > { %s1448_s27 = scalar_select %p27_p6, %s1269_s20, %s29_s14  }
  0x42   : > { %p1442_p5 = por %p1704_p3, %p36_p13  ;;  %p38_p9 = por %p37_p10, %p36_p13 }
  0x43   : > { %s208_s30 = sand.u32 1, %s1269_s20   ;;  %s879_s6 = sshll.u32 %s1273_s21, 7 }
  0x44   : > { %s1705_s23 = scalar_select %p1442_p5, 1, 0 }
  0x45   : > { %s839_s7 = sshll.u32 %s208_s30, 3  ;;  %s1455_s10 = scalar_lea.hbm %s1691_s0, %s879_s6 }
  0x46   : > { %s212_s11 = scalar_lea.vmem [#allocation2], %s839_s7  ;;  %p1459_p11 = pnand %p1055_p7, %p38_p9 }
  0x47   : > { %s219_s28 = sshll.u32 %s212_s11, 4  ;;  %s1463_s13 = scalar_lea.sflag [#allocation3], %s208_s30  ;;  %s1457_s28 = int_to_ptr.vmem [resolvable:$true] %s219_s28 }
  0x48   : > { %s1173_s14 = scalar_lea.hbm %s1455_s10, 128  ;;  %p1175_p0 = pneg %p1459_p11 }
  0x49   : > { %p1174_p12 = scmp.ne.s32.totalorder %s1455_s10, %s1173_s14  ;;  %s1178_s6 = scalar_lea.hbm %s1691_s0, 256 }
  0x4a   : > { %p1179_p13 = scmp.lt.u32.totalorder %s1455_s10, %s1691_s0  ;;  %p1180_p6 = scmp.lt.u32.totalorder %s1178_s6, %s1173_s14 }
  0x4b   : > { %p1176_p1 = pnand %p1175_p0, %p1174_p12  ;;  %p1182_p3 = scmp.lt.u32.totalorder %s1173_s14, %s1455_s10 }
  0x4c   : > { %p1181_p10 = por %p1180_p6, %p1179_p13 }
  0x4d   : > { %p1177_p2 = pneg %p1176_p1 }
  0x4e   : > { %p1183_p7 = por %p1182_p3, %p1181_p10 }
  0x50   : > { %p1184_p9 = pnand %p1183_p7, %p1177_p2 }
  0x52   : > { %1187 = shalt.err (!%p1184_p9)
}
  0x53   : > { %s1188_s30 = scalar_lea.vmem %s1457_s28, 128  ;;  %s1279_s11 = smov [#allocation2]  }
  0x54   : > { %p1189_p12 = scmp.ne.s32.totalorder %s1457_s28, %s1188_s30  ;;  %s1193_s17 = sshll.u32 %s1279_s11, 4  ;;  %s1194_s17 = int_to_ptr.vmem [resolvable:$false] %s1193_s17 }
  0x55   : > { %s1195_s7 = scalar_lea.vmem %s1194_s17, 256  ;;  %p1196_p4 = scmp.lt.s32.totalorder %s1457_s28, %s1194_s17 }
  0x56   : > { %p1191_p1 = pnand %p1189_p12, %p1175_p0  ;;  %p1197_p13 = scmp.lt.s32.totalorder %s1195_s7, %s1188_s30 }
  0x58   : > { %p1192_p5 = pneg %p1191_p1  ;;  %p1198_p6 = por %p1197_p13, %p1196_p4 }
  0x5a   : > { %p1199_p10 = pnand %p1198_p6, %p1192_p5 }
  0x5c   : > { %1202 = shalt.err (!%p1199_p10)
}
  0x5d   : > { %1048 = dma.hbm_to_vmem [thread:$0]  (!%p1459_p11), %s1455_s10, 128, %s1457_s28, %s1463_s13, %s1277_s15, %s1277_s15, %s1278_s16  }
  0x5e   : > { %231 = sbr.rel (%p1356_p8) target bundleno = 639 (0x27f), region = 40  ;;  %s1497_s14 = sand.u32 (!%p1356_p8), 1, %s1265_s19  }
  0x5f   : > { %s843_s6 = sshll.u32 (!%p1356_p8), %s1497_s14, 3  ;;  %s234_s8 = scalar_lea.sflag (!%p1356_p8), [#allocation3], %s1497_s14 }
  0x60   : > { %s1501_s9 = scalar_lea.vmem (!%p1356_p8), [#allocation2], %s843_s6  ;;  %p1707_p4 = scmp.ne.s32.totalorder (!%p1356_p8), %s1700_s24, 0 }
  0x65   : > { %1248 = dma.done.wait (%p1707_p4), %s234_s8, 128  }
  0x66   : > { %1250 = vsyncadd (%p1707_p4), %s234_s8, 4294967168  ;;  %p1708_p5 = scmp.eq.s32.totalorder %s1337_s22, 0 }
  0x68   : > { %1252 = dma.done.wait (%p1708_p5), [#allocation6], 2048   ;;  %p1709_p8 = pmov %p1708_p5 }
  0x69   : > { %v1280_v0 = vmov 0.0   ;;  %vm1281_vm0 = vmmov 0   ;;  %v1100_v1 = vld [vmem:[#allocation5] sm:$0xff]   ;;  %v1101_v2 = vld [vmem:[#allocation5 + $0x8] sm:$0xff]   ;;  %v1102_v3 = vld [vmem:[#allocation5 + $0x10] sm:$0xff]   ;;  %s846_s10 = sshll.u32 %s1497_s14, 4 }
  0x6a   : > { %1254 = vsyncadd (%p1709_p8), [#allocation6], 4294965248  ;;  %926 = vmatprep.subr.bf16.mxu0 %v1280_v0  ;;  %942 = vmatprep.mubr.msk.bf16.mxu0 %vm1281_vm0, %v1280_v0  ;;  %v1519_v4 = vld [vmem:[#allocation7] sm:$0xff]   ;;  %v1103_v5 = vld [vmem:[#allocation5 + $0x18] sm:$0xff]   ;;  %v1282_v30 = vmov 1.0|1.0  }
  0x6b   : > { %946 = vmatprep.subr.bf16.mxu1 %v1280_v0  ;;  %962 = vmatprep.mubr.msk.bf16.mxu1 %vm1281_vm0, %v1280_v0  ;;  %v1523_v6 = vld [vmem:[#allocation7 + $0x8] sm:$0xff]   ;;  %v1104_v7 = vld [vmem:[#allocation5 + $0x20] sm:$0xff]   ;;  %v1528_v8 = vld [vmem:[#allocation7 + $0x10] sm:$0xff]   ;;  %s271_s28 = scalar_lea.vmem [#allocation8], %s846_s10  ;;  %s880_s13 = sshll.u32 %s1337_s22, 8 }
  0x6c   : > { %927 = vmatpush3.bf16.msra.mxu0 %v1100_v1  ;;  %947 = vmatpush3.bf16.msra.mxu1 %v1519_v4  ;;  %v1105_v9 = vld [vmem:[#allocation5 + $0x28] sm:$0xff]   ;;  %v1533_v10 = vld [vmem:[#allocation7 + $0x18] sm:$0xff]   ;;  %v1106_v11 = vld [vmem:[#allocation5 + $0x30] sm:$0xff]   ;;  %s742_s12 = sshll.u32 %s271_s28, 4  ;;  %s1647_s17 = scalar_lea.hbm %s1696_s5, %s880_s13  ;;  %s1642_s12 = int_to_ptr.vmem [resolvable:$true] %s742_s12 }
  0x6d   : > { %928 = vmatprep.subr.bf16.mxu0 %v1280_v0  ;;  %948 = vmatprep.subr.bf16.mxu1 %v1280_v0  ;;  %v1538_v12 = vld [vmem:[#allocation7 + $0x20] sm:$0xff]   ;;  %v1107_v13 = vld [vmem:[#allocation5 + $0x38] sm:$0xff]   ;;  %v1543_v14 = vld [vmem:[#allocation7 + $0x28] sm:$0xff]   ;;  %s729_s7 = scalar_lea.sflag [#allocation4], %s1497_s14  ;;  %s1203_s6 = scalar_lea.vmem %s1642_s12, 256 }
  0x6e   : > { %v1108_v15 = vld [vmem:[%s1501_s9] sm:$0xff]   ;;  %p1204_p11 = scmp.ne.s32.totalorder %s1642_s12, %s1203_s6  ;;  %p1714_p0 = scmp.ne.s32.totalorder %s1705_s23, 0 }
  0x6f   : > { %v1564_v16 = vld [vmem:[#allocation7 + $0x30] sm:$0xff]   ;;  %v1570_v17 = vld [vmem:[#allocation7 + $0x38] sm:$0xff]   ;;  %s1283_s22 = smov [#allocation8]  }
  0x70   : > { %929 = vmatpush3.bf16.msra.mxu0 %v1101_v2  ;;  %949 = vmatpush3.bf16.msra.mxu1 %v1523_v6  ;;  %v847_v18 = vld [vmem:[%s1693_s2] ss:$0 sm:$0xff]  ;;  %p1205_p2 = pnand %p1204_p11, %p1714_p0  ;;  %s1207_s8 = sshll.u32 %s1283_s22, 4  ;;  %s1208_s8 = int_to_ptr.vmem [resolvable:$false] %s1207_s8 }
  0x71   : > { %930 = vmatprep.subr.bf16.mxu0 %v1280_v0  ;;  %950 = vmatprep.subr.bf16.mxu1 %v1280_v0  ;;  %v857_v48 = vld [vmem:[%s1695_s4] ss:$0 sm:$0xff]  ;;  %s1209_s9 = scalar_lea.vmem %s1208_s8, 512  ;;  %p1210_p7 = scmp.lt.s32.totalorder %s1642_s12, %s1208_s8 }
  0x72   : > { %p1206_p3 = pneg %p1205_p2  ;;  %p1211_p9 = scmp.lt.s32.totalorder %s1209_s9, %s1203_s6 }
  0x74   : > { %931 = vmatpush3.bf16.msra.mxu0 %v1102_v3  ;;  %951 = vmatpush3.bf16.msra.mxu1 %v1528_v8  ;;  %p1212_p12 = por %p1211_p9, %p1210_p7 }
  0x75   : > { %932 = vmatprep.subr.bf16.mxu0 %v1280_v0  ;;  %952 = vmatprep.subr.bf16.mxu1 %v1280_v0 }
  0x76   : > { %p1213_p1 = pnand %p1212_p12, %p1206_p3 }
  0x78   : > { %933 = vmatpush3.bf16.msra.mxu0 %v1103_v5  ;;  %953 = vmatpush3.bf16.msra.mxu1 %v1533_v10 }
  0x79   : > { %934 = vmatprep.subr.bf16.mxu0 %v1280_v0  ;;  %954 = vmatprep.subr.bf16.mxu1 %v1280_v0 }
  0x7c   : > { %935 = vmatpush3.bf16.msra.mxu0 %v1104_v7  ;;  %955 = vmatpush3.bf16.msra.mxu1 %v1538_v12 }
  0x7d   : > { %936 = vmatprep.subr.bf16.mxu0 %v1280_v0  ;;  %956 = vmatprep.subr.bf16.mxu1 %v1280_v0 }
  0x80   : > { %937 = vmatpush3.bf16.msra.mxu0 %v1105_v9  ;;  %957 = vmatpush3.bf16.msra.mxu1 %v1543_v14 }
  0x81   : > { %938 = vmatprep.subr.bf16.mxu0 %v1280_v0  ;;  %958 = vmatprep.subr.bf16.mxu1 %v1280_v0 }
  0x84   : > { %939 = vmatpush3.bf16.msra.mxu0 %v1106_v11  ;;  %959 = vmatpush3.bf16.msra.mxu1 %v1564_v16 }
  0x85   : > { %940 = vmatprep.subr.bf16.mxu0 %v1280_v0  ;;  %960 = vmatprep.subr.bf16.mxu1 %v1280_v0 }
  0x88   : > { %941 = vmatpush3.bf16.msra.mxu0 %v1107_v13  ;;  %961 = vmatpush3.bf16.msra.mxu1 %v1570_v17 }
  0x89   : > { %966 = vmatprep.subr.bf16.mxu0 %v1280_v0  ;;  %986 = vmatprep.subr.bf16.mxu1 %v1280_v0 }
  0x8b   : > { %943 = vmatmul.mubr.bf16.vlgmr.msra.gmra.mrb[0].mxu0 %v1108_v15 }
  0x8c   : > { %967 = vmatpush3.bf16.msra.mxu0 %v1519_v4  ;;  %982 = vmatprep.mubr.msk.bf16.mxu0 %vm1281_vm0, %v1280_v0 }
  0x8d   : > { %968 = vmatprep.subr.bf16.mxu0 %v1280_v0 }
  0x90   : > { %969 = vmatpush3.bf16.msra.mxu0 %v1523_v6 }
  0x91   : > { %970 = vmatprep.subr.bf16.mxu0 %v1280_v0 }
  0x94   : > { %971 = vmatpush3.bf16.msra.mxu0 %v1528_v8 }
  0x95   : > { %972 = vmatprep.subr.bf16.mxu0 %v1280_v0 }
  0x98   : > { %973 = vmatpush3.bf16.msra.mxu0 %v1533_v10 }
  0x99   : > { %974 = vmatprep.subr.bf16.mxu0 %v1280_v0 }
  0x9c   : > { %975 = vmatpush3.bf16.msra.mxu0 %v1538_v12 }
  0x9d   : > { %976 = vmatprep.subr.bf16.mxu0 %v1280_v0 }
  0xa0   : > { %977 = vmatpush3.bf16.msra.mxu0 %v1543_v14 }
  0xa1   : > { %978 = vmatprep.subr.bf16.mxu0 %v1280_v0 }
  0xa4   : > { %979 = vmatpush3.bf16.msra.mxu0 %v1564_v16 }
  0xa5   : > { %980 = vmatprep.subr.bf16.mxu0 %v1280_v0 }
  0xa8   : > { %981 = vmatpush3.bf16.msra.mxu0 %v1570_v17 }
  0xa9   : > { %1006 = vmatprep.subr.bf16.mxu0 %v1280_v0 }
 0x15e   : > { %v405_v19 = vpop.f32.mrb[0].mxu0 }
 0x15f   : > { %v406_v20 = vadd.f32 %v847_v18, %v405_v19  ;;  %v944_v21 = vpop.f32.mrb[1].mxu0 }
 0x160   : > { %v408_v22 = vpop.f32.mrb[2].mxu0 }
 0x161   : > { %v412_v23 = vmul.f32 0.5, %v406_v20  ;;  %v409_v24 = vadd.f32 %v847_v18, %v408_v22  ;;  %v945_v25 = vpop.f32.mrb[3].mxu0 }
 0x163   : > { %v413_v26 = vmul.f32 0.5, %v409_v24  ;;  %vm416_vm1 = vcmp.ge.f32.partialorder %v412_v23, 1.0 }
 0x164   : > { %v421_v27 = vsel %vm416_vm1, 0.0, %v412_v23 }
 0x165   : > { %vm417_vm2 = vcmp.ge.f32.partialorder %v413_v26, 1.0  ;;  %v530_v28 = vmul.f32 0.5, %v421_v27 }
 0x166   : > { %v422_v29 = vsel %vm417_vm2, 0.0, %v413_v26  ;;  %vm866_vm3 = vmpackc.low %vm417_vm2, %vm416_vm1 }
 0x167   : > { %963 = vmatmul.mubr.msk.bf16.vlgmr.msra.gmra.mrb[0].mxu1 %vm866_vm3, %v1282_v30  ;;  %v531_v31 = vmul.f32 0.5, %v422_v29  ;;  %v532_v32 = vadd.f32 %v530_v28, %v412_v23 }
 0x168   : > { %987 = vmatpush3.bf16.msra.mxu1 %v1519_v4  ;;  %1002 = vmatprep.mubr.msk.bf16.mxu1 %vm1281_vm0, %v1280_v0 }
 0x169   : > { %v533_v33 = vadd.f32 %v531_v31, %v413_v26  ;;  %988 = vmatprep.subr.bf16.mxu1 %v1280_v0  ;;  %vm534_vm4 = vcmp.ge.f32.partialorder %v532_v32, 1.0 }
 0x16a   : > { %v539_v34 = vsel %vm534_vm4, 0.0, %v532_v32 }
 0x16b   : > { %vm535_vm5 = vcmp.ge.f32.partialorder %v533_v33, 1.0  ;;  %v596_v35 = vmul.f32 0.5, %v539_v34 }
 0x16c   : > { %989 = vmatpush3.bf16.msra.mxu1 %v1523_v6  ;;  %v540_v36 = vsel %vm535_vm5, 0.0, %v533_v33  ;;  %vm868_vm6 = vmpackc.low %vm535_vm5, %vm534_vm4 }
 0x16d   : > { %983 = vmatmul.mubr.msk.bf16.vlgmr.msra.gmra.mrb[4].mxu0 %vm868_vm6, %v1282_v30  ;;  %v597_v37 = vmul.f32 0.5, %v540_v36  ;;  %990 = vmatprep.subr.bf16.mxu1 %v1280_v0  ;;  %v598_v38 = vadd.f32 %v596_v35, %v412_v23 }
 0x16e   : > { %1007 = vmatpush3.bf16.msra.mxu0 %v1519_v4  ;;  %1022 = vmatprep.mubr.msk.bf16.mxu0 %vm1281_vm0, %v1280_v0 }
 0x16f   : > { %1008 = vmatprep.subr.bf16.mxu0 %v1280_v0  ;;  %v599_v39 = vadd.f32 %v597_v37, %v413_v26  ;;  %vm600_vm7 = vcmp.ge.f32.partialorder %v598_v38, 1.0 }
 0x170   : > { %991 = vmatpush3.bf16.msra.mxu1 %v1528_v8  ;;  %v605_v40 = vsel %vm600_vm7, 0.0, %v598_v38 }
 0x171   : > { %992 = vmatprep.subr.bf16.mxu1 %v1280_v0  ;;  %vm601_vm8 = vcmp.ge.f32.partialorder %v599_v39, 1.0  ;;  %v662_v41 = vmul.f32 0.5, %v605_v40 }
 0x172   : > { %1009 = vmatpush3.bf16.msra.mxu0 %v1523_v6  ;;  %v606_v42 = vsel %vm601_vm8, 0.0, %v599_v39  ;;  %vm1592_vm9 = vmpackc.low %vm601_vm8, %vm600_vm7 }
 0x173   : > { %1010 = vmatprep.subr.bf16.mxu0 %v1280_v0  ;;  %v663_v44 = vmul.f32 0.5, %v606_v42  ;;  %v664_v45 = vadd.f32 %v662_v41, %v412_v23 }
 0x174   : > { %993 = vmatpush3.bf16.msra.mxu1 %v1533_v10 }
 0x175   : > { %994 = vmatprep.subr.bf16.mxu1 %v1280_v0  ;;  %v665_v46 = vadd.f32 %v663_v44, %v413_v26  ;;  %vm666_vm10 = vcmp.ge.f32.partialorder %v664_v45, 1.0 }
 0x176   : > { %1011 = vmatpush3.bf16.msra.mxu0 %v1528_v8 }
 0x177   : > { %1012 = vmatprep.subr.bf16.mxu0 %v1280_v0  ;;  %vm667_vm11 = vcmp.ge.f32.partialorder %v665_v46, 1.0 }
 0x178   : > { %995 = vmatpush3.bf16.msra.mxu1 %v1538_v12  ;;  %vm1602_vm12 = vmpackc.low %vm667_vm11, %vm666_vm10 }
 0x179   : > { %996 = vmatprep.subr.bf16.mxu1 %v1280_v0 }
 0x17a   : > { %1013 = vmatpush3.bf16.msra.mxu0 %v1533_v10 }
 0x17b   : > { %1014 = vmatprep.subr.bf16.mxu0 %v1280_v0 }
 0x17c   : > { %997 = vmatpush3.bf16.msra.mxu1 %v1543_v14 }
 0x17d   : > { %998 = vmatprep.subr.bf16.mxu1 %v1280_v0 }
 0x17e   : > { %1015 = vmatpush3.bf16.msra.mxu0 %v1538_v12 }
 0x17f   : > { %1016 = vmatprep.subr.bf16.mxu0 %v1280_v0 }
 0x180   : > { %999 = vmatpush3.bf16.msra.mxu1 %v1564_v16 }
 0x181   : > { %1000 = vmatprep.subr.bf16.mxu1 %v1280_v0 }
 0x182   : > { %1017 = vmatpush3.bf16.msra.mxu0 %v1543_v14 }
 0x183   : > { %1018 = vmatprep.subr.bf16.mxu0 %v1280_v0 }
 0x184   : > { %1001 = vmatpush3.bf16.msra.mxu1 %v1570_v17 }
 0x186   : > { %1019 = vmatpush3.bf16.msra.mxu0 %v1564_v16 }
 0x187   : > { %1003 = vmatmul.mubr.msk.bf16.vlgmr.msra.gmra.mrb[4].mxu1 %vm1592_vm9, %v1282_v30  ;;  %1020 = vmatprep.subr.bf16.mxu0 %v1280_v0 }
 0x18a   : > { %1021 = vmatpush3.bf16.msra.mxu0 %v1570_v17 }
 0x18d   : > { %1023 = vmatmul.mubr.msk.bf16.vlgmr.msra.gmra.mrb[8].mxu0 %vm1602_vm12, %v1282_v30 }
 0x23a   : > { %v511_v49 = vpop.f32.mrb[0].mxu1 }
 0x23b   : > { %v512_v50 = vadd.f32 %v857_v48, %v511_v49  ;;  %v964_v51 = vpop.f32.mrb[1].mxu1 }
 0x23c   : > { %v514_v52 = vpop.f32.mrb[2].mxu1 }
 0x23d   : > { %v518_v53 = vmul.f32 0.5, %v512_v50  ;;  %v515_v54 = vadd.f32 %v857_v48, %v514_v52  ;;  %v965_v55 = vpop.f32.mrb[3].mxu1 }
 0x23f   : > { %vm522_vm13 = vcmp.ge.f32.partialorder %v518_v53, 1.0  ;;  %v519_v56 = vmul.f32 0.5, %v515_v54 }
 0x240   : > { %v528_v57 = vsel %vm522_vm13, 0.0, %v518_v53  ;;  %v575_v58 = vpop.f32.mrb[4].mxu0  ;;  %v524_v8 = vsel %vm522_vm13, 1.0, %v1280_v0 }
 0x241   : > { %vm523_vm14 = vcmp.ge.f32.partialorder %v519_v56, 1.0  ;;  %v576_v59 = vadd.f32 %v857_v48, %v575_v58  ;;  %v984_v60 = vpop.f32.mrb[5].mxu0  ;;  %v582_v63 = vmul.f32 0.5, %v528_v57 }
 0x242   : > { %v529_v61 = vsel %vm523_vm14, 0.0, %v519_v56  ;;  %v578_v62 = vpop.f32.mrb[6].mxu0  ;;  %v525_v11 = vsel %vm523_vm14, 1.0, %v1280_v0 }
 0x243   : > { %v584_v1 = vmul.f32 0.5, %v576_v59  ;;  %v579_v2 = vadd.f32 %v857_v48, %v578_v62  ;;  %v985_v3 = vpop.f32.mrb[7].mxu0  ;;  %v583_v4 = vmul.f32 0.5, %v529_v61 }
 0x245   : > { %v586_v5 = vadd.f32 %v584_v1, %v582_v63  ;;  %v585_v6 = vmul.f32 0.5, %v579_v2 }
 0x247   : > { %vm588_vm15 = vcmp.ge.f32.partialorder %v586_v5, 1.0  ;;  %v587_v7 = vadd.f32 %v585_v6, %v583_v4 }
 0x248   : > { %v590_v9 = vsel %vm588_vm15, 1.0, %v1280_v0  ;;  %v594_v14 = vsel %vm588_vm15, 0.0, %v586_v5 }
 0x249   : > { %v592_v10 = vadd.f32 %v590_v9, %v524_v8  ;;  %vm589_vm0 = vcmp.ge.f32.partialorder %v587_v7, 1.0  ;;  %v648_v20 = vmul.f32 0.5, %v594_v14 }
 0x24a   : > { %v591_v12 = vsel %vm589_vm0, 1.0, %v1280_v0  ;;  %v595_v18 = vsel %vm589_vm0, 0.0, %v587_v7 }
 0x24b   : > { %v593_v13 = vadd.f32 %v591_v12, %v525_v11  ;;  %v649_v25 = vmul.f32 0.5, %v595_v18 }
 0x25a   : > { %v641_v15 = vpop.f32.mrb[4].mxu1 }
 0x25b   : > { %v642_v16 = vadd.f32 %v857_v48, %v641_v15  ;;  %v1004_v17 = vpop.f32.mrb[5].mxu1 }
 0x25c   : > { %v644_v19 = vpop.f32.mrb[6].mxu1 }
 0x25d   : > { %v650_v21 = vmul.f32 0.5, %v642_v16  ;;  %v645_v22 = vadd.f32 %v857_v48, %v644_v19  ;;  %v1005_v23 = vpop.f32.mrb[7].mxu1 }
 0x25f   : > { %v652_v24 = vadd.f32 %v650_v21, %v648_v20  ;;  %v651_v26 = vmul.f32 0.5, %v645_v22 }
 0x260   : > { %v705_v27 = vpop.f32.mrb[8].mxu0 }
 0x261   : > { %vm654_vm1 = vcmp.ge.f32.partialorder %v652_v24, 1.0  ;;  %v653_v28 = vadd.f32 %v651_v26, %v649_v25  ;;  %v706_v29 = vadd.f32 %v857_v48, %v705_v27  ;;  %v1024_v30 = vpop.f32.mrb[9].mxu0 }
 0x262   : > { %v656_v31 = vsel %vm654_vm1, 1.0, %v1280_v0  ;;  %v660_v32 = vsel %vm654_vm1, 0.0, %v652_v24  ;;  %v708_v33 = vpop.f32.mrb[10].mxu0 }
 0x263   : > { %v658_v34 = vadd.f32 %v656_v31, %v592_v10  ;;  %vm655_vm2 = vcmp.ge.f32.partialorder %v653_v28, 1.0  ;;  %v712_v35 = vmul.f32 0.5, %v660_v32  ;;  %v714_v36 = vmul.f32 0.5, %v706_v29  ;;  %v1025_v37 = vpop.f32.mrb[11].mxu0 }
 0x264   : > { %v657_v38 = vsel %vm655_vm2, 1.0, %v1280_v0  ;;  %v661_v39 = vsel %vm655_vm2, 0.0, %v653_v28  ;;  %v709_v40 = vadd.f32 %v857_v48, %v708_v33 }
 0x265   : > { %v659_v41 = vadd.f32 %v657_v38, %v593_v13  ;;  %v716_v42 = vadd.f32 %v714_v36, %v712_v35  ;;  %v713_v43 = vmul.f32 0.5, %v661_v39 }
 0x266   : > { %v715_v44 = vmul.f32 0.5, %v709_v40 }
 0x267   : > { %vm718_vm3 = vcmp.ge.f32.partialorder %v716_v42, 1.0 }
 0x268   : > { %v720_v45 = vsel %vm718_vm3, 1.0, %v1280_v0  ;;  %v717_v46 = vadd.f32 %v715_v44, %v713_v43 }
 0x269   : > { %v722_v47 = vadd.f32 %v720_v45, %v658_v34 }
 0x26a   : > { %vm719_vm4 = vcmp.ge.f32.partialorder %v717_v46, 1.0 }
 0x26b   : > { %v724_v49 = vmul.f32 0.25, %v722_v47  ;;  %v721_v50 = vsel %vm719_vm4, 1.0, %v1280_v0 }
 0x26c   : > { %v723_v48 = vadd.f32 %v721_v50, %v659_v41 }
 0x26d   : > { %726 = vst [vmem:[%s271_s28] sm:$0xff] %v724_v49 }
 0x26e   : > { %v725_v51 = vmul.f32 0.25, %v723_v48 }
 0x270   : > { %727 = vst [vmem:[%s271_s28 + $0x8] sm:$0xff] %v725_v51 }
 0x271   : > { %1216 = shalt.err (!%p1213_p1)
}
 0x272   : > { %s1217_s24 = scalar_lea.hbm %s1647_s17, 256  ;;  %s1221_s16 = scalar_lea.hbm %s1696_s5, 512 }
 0x273   : > { %p1218_p13 = scmp.ne.s32.totalorder %s1647_s17, %s1217_s24  ;;  %p1222_p4 = scmp.lt.u32.totalorder %s1647_s17, %s1696_s5 }
 0x274   : > { %p1223_p5 = scmp.lt.u32.totalorder %s1221_s16, %s1217_s24  ;;  %p1225_p11 = scmp.lt.u32.totalorder %s1217_s24, %s1647_s17 }
 0x275   : > { %p1219_p6 = pnand %p1218_p13, %p1714_p0 }
 0x276   : > { %p1224_p8 = por %p1223_p5, %p1222_p4 }
 0x277   : > { %p1220_p10 = pneg %p1219_p6 }
 0x278   : > { %p1226_p2 = por %p1225_p11, %p1224_p8 }
 0x27a   : > { %p1227_p3 = pnand %p1226_p2, %p1220_p10 }
 0x27c   : > { %1230 = shalt.err (!%p1227_p3)
}
 0x27d   : > { %s1284_s13 = smov 128   ;;  %s1285_s30 = smov 8  }
 0x27e   : > { %1036 = dma.vmem_to_hbm [thread:$0]  (%p1714_p0), %s1642_s12, 256, %s1647_s17, %s729_s7, %s1284_s13, %s1284_s13, %s1285_s30  }
 0x27f PF: > { %s757_s11 = sand.u32 1, %s1261_s18   ;;  %p1715_p7 = scmp.ne.s32.totalorder %s1701_s25, 0 }
 0x280   : > { %p1716_p9 = scmp.ge.s32.totalorder %s1273_s21, 2  ;;  %s758_s6 = scalar_lea.sflag [#allocation4], %s757_s11 }
 0x282   : > { %p1050_p12 = pnand %p1716_p9, %p1715_p7 }
 0x284   : > { %1256 = dma.done.wait (!%p1050_p12), %s758_s6, 256  }
 0x285   : > { %1258 = vsyncadd (!%p1050_p12), %s758_s6, 4294967040  ;;  %p19_p1 = scmp.ge.s32.totalorder %s1432_s29, 4   ;;  %s1717_s18 = smov %s1265_s19 }
 0x286   : > { %s1718_s19 = smov %s1269_s20  ;;  %s1719_s20 = smov %s1448_s27 }
 0x287   : > { %s1720_s21 = smov %s1432_s29  ;;  %21 = sbr.rel (!%p19_p1) target bundleno = 6 (0x6), region = 93 }
 0x28e   :  { %763 = vsyncpa [#allocation3], 1 }
 0x28f   :  { %765 = vsyncpa [#allocation3 + $0x1], 1 }
 0x290   :  { %766 = vsyncpa [#allocation6], 1 }
 0x291   :  { %767 = vsyncpa [#allocation4], 1 }
 0x292   :  { %769 = vsyncpa [#allocation4 + $0x1], 1 }

</bundles_post_ra>
